<compile_context>
chip_gen: v5e
topology: v5e:2x2
jax: 0.10.0
libtpu: 0.0.40
codegen_flags: <defaults>
</compile_context>

<pallas_src>
import functools
import math

import jax
import jax.numpy as jnp
from jax import lax
from jax.experimental import pallas as pl
from jax.experimental.pallas import tpu as pltpu


def _round_up(x, m):
    return ((x + m - 1) // m) * m


def _cell_kernel(mem_dim, max_branch, head_ref, yp_ref, wh_ref, wb_ref, s_ref, out_ref):
    M = mem_dim
    R = max_branch

    head = head_ref[...]                 # (bb, in_dim + R), matmul dtype
    yp = yp_ref[...]                     # (bb, 2M) f32
    yps = yp[:, :M]                      # parent cell state  (f32)
    yph = yp[:, M:]                      # parent hidden state (f32)

    # Branch-slab selection on the MXU: head already carries the one-hot columns, so
    # head @ S is the exact 0/1 mask of the active M-wide slab (exact in bf16 too).
    # No iota compares, no per-row scalar operand, no lane extraction before the matmul.
    bmask = jnp.dot(head, s_ref[...], preferred_element_type=jnp.float32)      # (bb, R*M)
    x_branch = (jnp.tile(yph, (1, R)) * bmask).astype(wb_ref.dtype)            # (bb, R*M)

    # Two MXU dots replace the misaligned concatenate + single dot; the combined bias row
    # is selected by the one-hot columns inside the first dot.  Accumulate in f32.
    z = (jnp.dot(head, wh_ref[...], preferred_element_type=jnp.float32)
         + jnp.dot(x_branch, wb_ref[...], preferred_element_type=jnp.float32))  # (bb, 4M)

    # Full-width activations: 2 EUP passes over the whole 4M-lane pre-activation
    # (gate layout [i | o | u | f]; only the u window gets tanh), then slice gates.
    lane = lax.broadcasted_iota(jnp.int32, z.shape, 1)
    act = jnp.where((lane >= 2 * M) & (lane < 3 * M), jnp.tanh(z), jax.nn.sigmoid(z))

    i = act[:, 0:M]
    o = act[:, M:2 * M]
    u = act[:, 2 * M:3 * M]
    f = act[:, 3 * M:4 * M]

    c = i * u + f * yps
    h = o * jnp.tanh(c)
    # Single full-tile store of the assembled [c | h] value (one 2M-wide store
    # instead of two M-wide masked stores).
    out_ref[...] = jnp.concatenate([c, h], axis=-1).astype(out_ref.dtype)


def _pack_weights(params, dtype):
    """Fuse the 8 parameter tensors into (W_head, W_branch, S).

    Columns (N = 4M): [ iou (3M) | f (M) ].
    W_head rows: [ in_dim input-weight rows | R combined-bias rows ].
    W_branch rows: branch r occupies rows [r*M, (r+1)*M).
    S maps the one-hot columns of `head` to the 0/1 mask of branch r's slab.
    """
    wx = jnp.concatenate([params["ioux_w"], params["fx_w"]], axis=-1)            # (in, 4M)
    b_all = (jnp.concatenate([params["ioux_b"], params["fx_b"]], axis=-1)        # (1, 4M)
             + jnp.concatenate([params["iouh_b"], params["fh_b"]], axis=-1))     # (R, 4M)
    w_head = jnp.concatenate([wx, b_all], axis=0).astype(dtype)                  # (in+R, 4M)

    wh = jnp.concatenate([params["iouh_w"], params["fh_w"]], axis=-1)            # (R, M, 4M)
    R, M = wh.shape[0], wh.shape[1]
    w_branch = wh.reshape(R * M, 4 * M).astype(dtype)                            # (R*M, 4M)

    in_dim = wx.shape[0]
    expand = jnp.kron(jnp.eye(R, dtype=jnp.float32), jnp.ones((1, M), jnp.float32))
    s = jnp.concatenate([jnp.zeros((in_dim, R * M), jnp.float32), expand],
                        axis=0).astype(dtype)                                    # (in+R, R*M)
    return w_head, w_branch, s


def parent_expand_lstm_cell(y, y_r, y_p, params, *, mem_dim, max_branch,
                            block_b=1024, matmul_dtype=jnp.float32):
    B, in_dim = y.shape
    M, R = mem_dim, max_branch
    Kh = in_dim + R
    N = 4 * M

    # ---- wrapper-side prep (plain XLA, fused & cheap) ------------------------------
    ord_mod = (y_r.astype(jnp.int32) % R)                       # floor-mod, matches torch
    onehot = jax.nn.one_hot(ord_mod, R, dtype=jnp.float32)      # (B, R)
    head = jnp.concatenate([y.astype(jnp.float32), onehot], axis=-1).astype(matmul_dtype)
    yp = y_p.astype(jnp.float32)
    w_head, w_branch, s_exp = _pack_weights(params, matmul_dtype)

    # ---- batch tiling: cdiv grid with zero-padded tail ------------------------------
    block_b = _round_up(max(block_b, 8), 8)
    if B >= 2 * block_b:
        bb = block_b                                   # many big blocks
    elif B > 256:
        bb = _round_up(-(-B // 2), 8)                  # >=2 blocks -> both v7x TCs busy
    else:
        bb = _round_up(B, 8)                           # tiny batch: one small block
    num_blocks = pl.cdiv(B, bb)
    Bp = num_blocks * bb
    if Bp != B:
        head = jnp.pad(head, ((0, Bp - B), (0, 0)))    # zero rows -> finite, masked-off output
        yp = jnp.pad(yp, ((0, Bp - B), (0, 0)))

    itm = jnp.dtype(matmul_dtype).itemsize
    cost = pl.CostEstimate(
        flops=2 * Bp * N * (Kh + R * M) + 2 * Bp * Kh * (R * M),
        transcendentals=Bp * (2 * N + M),
        bytes_accessed=(Bp * Kh * itm + Bp * 2 * M * 4 + Bp * 2 * M * 4
                        + (Kh * N + R * M * N + Kh * R * M) * itm),
    )

    kern = functools.partial(_cell_kernel, M, R)
    out = pl.pallas_call(
        kern,
        out_shape=jax.ShapeDtypeStruct((Bp, 2 * M), jnp.float32),
        grid=(num_blocks,),
        in_specs=[
            pl.BlockSpec((bb, Kh), lambda i: (i, 0)),
            pl.BlockSpec((bb, 2 * M), lambda i: (i, 0)),
            pl.BlockSpec((Kh, N), lambda i: (0, 0)),        # constant: resident in VMEM
            pl.BlockSpec((R * M, N), lambda i: (0, 0)),     # constant: resident in VMEM
            pl.BlockSpec((Kh, R * M), lambda i: (0, 0)),    # constant: resident in VMEM
        ],
        out_specs=pl.BlockSpec((bb, 2 * M), lambda i: (i, 0)),
        compiler_params=pltpu.CompilerParams(
            dimension_semantics=("parallel",),              # megacore shard on v7x
            vmem_limit_bytes=32 * 1024 * 1024,              # explicit: v5e default is 16 MiB
        ),
        cost_estimate=cost,
    )(head, yp, w_head, w_branch, s_exp)
    return out[:B]


def init_params(key, in_dim, mem_dim, max_branch):
    """Deterministic synthetic parameters (kaiming-uniform-like bounds), kernel layouts."""
    ks = jax.random.split(key, 8)

    def u(k, shape, fan_in):
        bound = 1.0 / math.sqrt(fan_in)
        return jax.random.uniform(k, shape, jnp.float32, -bound, bound)

    return {
        # nn.Linear(in_dim, 3*mem_dim):  W (in, 3M), b (1, 3M)
        "ioux_w": u(ks[0], (in_dim, 3 * mem_dim), in_dim),
        "ioux_b": u(ks[1], (1, 3 * mem_dim), in_dim),
        # nn.Linear(in_dim, mem_dim):    W (in, M), b (1, M)
        "fx_w": u(ks[2], (in_dim, mem_dim), in_dim),
        "fx_b": u(ks[3], (1, mem_dim), in_dim),
        # BranchLinear(mem_dim, 3*mem_dim, branch): W (R, M, 3M), b (R, 3M)
        "iouh_w": u(ks[4], (max_branch, mem_dim, 3 * mem_dim), mem_dim),
        "iouh_b": u(ks[5], (max_branch, 3 * mem_dim), mem_dim),
        # BranchLinear(mem_dim, mem_dim, branch):   W (R, M, M), b (R, M)
        "fh_w": u(ks[6], (max_branch, mem_dim, mem_dim), mem_dim),
        "fh_b": u(ks[7], (max_branch, mem_dim), mem_dim),
    }


def reference(y, y_r, y_p, params, *, mem_dim, max_branch, operand_dtype=jnp.float32):
    """Pure-JAX replica of the PyTorch forward.  `operand_dtype` mimics the kernel's
    matmul-operand cast (weights / y / parent-hidden rounded, accumulation in f32)."""
    q = lambda a: a.astype(operand_dtype).astype(jnp.float32)
    y_p_s = y_p[:, :mem_dim]
    y_p_h = y_p[:, mem_dim:]
    order = (y_r.astype(jnp.int32) % max_branch)

    iouh_w_sel = q(params["iouh_w"])[order]          # (B, M, 3M)
    iouh_b_sel = q(params["iouh_b"])[order]          # (B, 3M)
    fh_w_sel = q(params["fh_w"])[order]              # (B, M, M)
    fh_b_sel = q(params["fh_b"])[order]              # (B, M)

    iou = (q(y) @ q(params["ioux_w"]) + q(params["ioux_b"])
           + jnp.einsum("bm,bmo->bo", q(y_p_h), iouh_w_sel) + iouh_b_sel)
    i = jax.nn.sigmoid(iou[:, :mem_dim])
    o = jax.nn.sigmoid(iou[:, mem_dim:2 * mem_dim])
    u = jnp.tanh(iou[:, 2 * mem_dim:])
    f = jax.nn.sigmoid(q(y) @ q(params["fx_w"]) + q(params["fx_b"])
                       + jnp.einsum("bm,bmo->bo", q(y_p_h), fh_w_sel) + fh_b_sel)
    c = i * u + f * y_p_s
    h = o * jnp.tanh(c)
    return jnp.concatenate([c, h], axis=-1)


if __name__ == "__main__":
    in_dim, mem_dim, max_branch = 32, 32, 4

    key = jax.random.PRNGKey(0)
    k_p, k_data = jax.random.split(key)
    params = init_params(k_p, in_dim, mem_dim, max_branch)

    # (B, block_b, matmul dtype, tolerance):
    #   - tiny single block (f32, tight)
    #   - non-multiple-of-8/128 batch forcing cdiv grid + zero-padded tail, 4 parallel blocks
    #   - bf16 matmul-operand path (v6e/v7x recommendation), looser tolerance
    cases = [
        (8, 1024, jnp.float32, 2e-4),
        (200, 64, jnp.float32, 2e-4),
        (256, 1024, jnp.bfloat16, 8e-3),
    ]
    for B, block_b, mdt, tol in cases:
        k_y, k_yp, k_r, k_data = jax.random.split(k_data, 4)
        y = jax.random.normal(k_y, (B, in_dim), jnp.float32)
        y_p = jax.random.normal(k_yp, (B, 2 * mem_dim), jnp.float32)
        y_r = jax.random.randint(k_r, (B,), 0, 2 * max_branch, jnp.int32)

        out = parent_expand_lstm_cell(y, y_r, y_p, params, mem_dim=mem_dim,
                                      max_branch=max_branch, block_b=block_b,
                                      matmul_dtype=mdt)
        out = jax.block_until_ready(out)

        ref = reference(y, y_r, y_p, params, mem_dim=mem_dim, max_branch=max_branch,
                        operand_dtype=mdt)
        assert out.shape == (B, 2 * mem_dim)
        err = float(jnp.max(jnp.abs(out - ref)))
        assert err <= tol, f"B={B} dtype={jnp.dtype(mdt).name}: max abs diff {err}"

    print("KERNEL_OK")
</pallas_src>

<mosaic_0001>
module attributes {stable_mosaic.version = 11 : i64} {
  func.func @_cell_kernel(%arg0: i32, %arg1: memref<8x36xf32, #tpu.memory_space<vmem>>, %arg2: memref<8x64xf32, #tpu.memory_space<vmem>>, %arg3: memref<36x128xf32, #tpu.memory_space<vmem>>, %arg4: memref<128x128xf32, #tpu.memory_space<vmem>>, %arg5: memref<36x128xf32, #tpu.memory_space<vmem>>, %arg6: memref<8x64xf32, #tpu.memory_space<vmem>>) attributes {dimension_semantics = [#tpu.dimension_semantics<parallel>], iteration_bounds = array<i64: 1>, scalar_prefetch = 0 : i64, scratch_operands = 0 : i64, tpu.core_type = #tpu.core_type<tc>, window_params = [{transform_indices = @transform_0, window_bounds = array<i64: 8, 36>}, {transform_indices = @transform_1, window_bounds = array<i64: 8, 64>}, {pipeline_mode = #tpu.pipeline_mode<synchronous>, transform_indices = @transform_2, window_bounds = array<i64: 36, 128>}, {pipeline_mode = #tpu.pipeline_mode<synchronous>, transform_indices = @transform_3, window_bounds = array<i64: 128, 128>}, {pipeline_mode = #tpu.pipeline_mode<synchronous>, transform_indices = @transform_4, window_bounds = array<i64: 36, 128>}, {transform_indices = @transform_5, window_bounds = array<i64: 8, 64>}]} {
    %c0 = arith.constant 0 : index
    %c0_0 = arith.constant 0 : index
    %0 = vector.load %arg1[%c0, %c0_0] : memref<8x36xf32, #tpu.memory_space<vmem>>, vector<8x36xf32>
    %c0_1 = arith.constant 0 : index
    %c0_2 = arith.constant 0 : index
    %1 = vector.load %arg2[%c0_1, %c0_2] : memref<8x64xf32, #tpu.memory_space<vmem>>, vector<8x64xf32>
    %2 = vector.extract_strided_slice %1 {offsets = [0, 0], sizes = [8, 32], strides = [1, 1]} : vector<8x64xf32> to vector<8x32xf32>
    %3 = vector.extract_strided_slice %1 {offsets = [0, 32], sizes = [8, 32], strides = [1, 1]} : vector<8x64xf32> to vector<8x32xf32>
    %c0_3 = arith.constant 0 : index
    %c0_4 = arith.constant 0 : index
    %4 = vector.load %arg5[%c0_3, %c0_4] : memref<36x128xf32, #tpu.memory_space<vmem>>, vector<36x128xf32>
    %cst = arith.constant dense<0.000000e+00> : vector<8x128xf32>
    %5 = tpu.matmul %0, %4, %cst {dimension_numbers = #tpu.dot_dimension_numbers<[1], [0], [0], [1], [0, 0, 1, 1], [], []>} : vector<8x36xf32>, vector<36x128xf32>, vector<8x128xf32> -> vector<8x128xf32>
    %6 = tpu.concatenate %3, %3, %3, %3 in 1 : vector<8x32xf32>, vector<8x32xf32>, vector<8x32xf32>, vector<8x32xf32> -> vector<8x128xf32>
    %7 = arith.mulf %6, %5 : vector<8x128xf32>
    %c0_5 = arith.constant 0 : index
    %c0_6 = arith.constant 0 : index
    %8 = vector.load %arg3[%c0_5, %c0_6] : memref<36x128xf32, #tpu.memory_space<vmem>>, vector<36x128xf32>
    %cst_7 = arith.constant dense<0.000000e+00> : vector<8x128xf32>
    %9 = tpu.matmul %0, %8, %cst_7 {dimension_numbers = #tpu.dot_dimension_numbers<[1], [0], [0], [1], [0, 0, 1, 1], [], []>} : vector<8x36xf32>, vector<36x128xf32>, vector<8x128xf32> -> vector<8x128xf32>
    %c0_8 = arith.constant 0 : index
    %c0_9 = arith.constant 0 : index
    %10 = vector.load %arg4[%c0_8, %c0_9] : memref<128x128xf32, #tpu.memory_space<vmem>>, vector<128x128xf32>
    %cst_10 = arith.constant dense<0.000000e+00> : vector<8x128xf32>
    %11 = tpu.matmul %7, %10, %cst_10 {dimension_numbers = #tpu.dot_dimension_numbers<[1], [0], [0], [1], [0, 0, 1, 1], [], []>} : vector<8x128xf32>, vector<128x128xf32>, vector<8x128xf32> -> vector<8x128xf32>
    %12 = arith.addf %9, %11 : vector<8x128xf32>
    %13 = tpu.iota {dimensions = array<i32: 1>} : vector<8x128xi32>
    %c64_i32 = arith.constant 64 : i32
    %14 = vector.broadcast %c64_i32 : i32 to vector<8x128xi32>
    %15 = arith.cmpi sge, %13, %14 : vector<8x128xi32>
    %c96_i32 = arith.constant 96 : i32
    %16 = vector.broadcast %c96_i32 : i32 to vector<8x128xi32>
    %17 = arith.cmpi slt, %13, %16 : vector<8x128xi32>
    %18 = arith.andi %15, %17 : vector<8x128xi1>
    %19 = math.tanh %12 : vector<8x128xf32>
    %20 = arith.negf %12 : vector<8x128xf32>
    %21 = math.exp %20 : vector<8x128xf32>
    %cst_11 = arith.constant 1.000000e+00 : f32
    %22 = vector.broadcast %cst_11 : f32 to vector<8x128xf32>
    %23 = arith.addf %22, %21 : vector<8x128xf32>
    %24 = arith.divf %22, %23 : vector<8x128xf32>
    %25 = arith.select %18, %19, %24 : vector<8x128xi1>, vector<8x128xf32>
    %26 = vector.extract_strided_slice %25 {offsets = [0, 0], sizes = [8, 32], strides = [1, 1]} : vector<8x128xf32> to vector<8x32xf32>
    %27 = vector.extract_strided_slice %25 {offsets = [0, 32], sizes = [8, 32], strides = [1, 1]} : vector<8x128xf32> to vector<8x32xf32>
    %28 = vector.extract_strided_slice %25 {offsets = [0, 64], sizes = [8, 32], strides = [1, 1]} : vector<8x128xf32> to vector<8x32xf32>
    %29 = vector.extract_strided_slice %25 {offsets = [0, 96], sizes = [8, 32], strides = [1, 1]} : vector<8x128xf32> to vector<8x32xf32>
    %30 = arith.mulf %26, %28 : vector<8x32xf32>
    %31 = arith.mulf %29, %2 : vector<8x32xf32>
    %32 = arith.addf %30, %31 : vector<8x32xf32>
    %33 = math.tanh %32 : vector<8x32xf32>
    %34 = arith.mulf %27, %33 : vector<8x32xf32>
    %35 = tpu.concatenate %32, %34 in 1 : vector<8x32xf32>, vector<8x32xf32> -> vector<8x64xf32>
    %c0_12 = arith.constant 0 : index
    %c0_13 = arith.constant 0 : index
    %36 = vector.load %arg6[%c0_12, %c0_13] : memref<8x64xf32, #tpu.memory_space<vmem>>, vector<8x64xf32>
    tpu.vector_store %arg6[%c0_12, %c0_13], %35 {strides = array<i32>} : memref<8x64xf32, #tpu.memory_space<vmem>>, vector<8x64xf32>,
    return
  }
  func.func @transform_0(%arg0: i32) -> (i32, i32) {
    %c0_i32 = arith.constant 0 : i32
    %c0_i32_0 = arith.constant 0 : i32
    return %arg0, %c0_i32 : i32, i32
  }
  func.func @transform_1(%arg0: i32) -> (i32, i32) {
    %c0_i32 = arith.constant 0 : i32
    %c0_i32_0 = arith.constant 0 : i32
    return %arg0, %c0_i32 : i32, i32
  }
  func.func @transform_2(%arg0: i32) -> (i32, i32) {
    %c0_i32 = arith.constant 0 : i32
    %c0_i32_0 = arith.constant 0 : i32
    %c0_i32_1 = arith.constant 0 : i32
    return %c0_i32, %c0_i32_0 : i32, i32
  }
  func.func @transform_3(%arg0: i32) -> (i32, i32) {
    %c0_i32 = arith.constant 0 : i32
    %c0_i32_0 = arith.constant 0 : i32
    %c0_i32_1 = arith.constant 0 : i32
    return %c0_i32, %c0_i32_0 : i32, i32
  }
  func.func @transform_4(%arg0: i32) -> (i32, i32) {
    %c0_i32 = arith.constant 0 : i32
    %c0_i32_0 = arith.constant 0 : i32
    %c0_i32_1 = arith.constant 0 : i32
    return %c0_i32, %c0_i32_0 : i32, i32
  }
  func.func @transform_5(%arg0: i32) -> (i32, i32) {
    %c0_i32 = arith.constant 0 : i32
    %c0_i32_0 = arith.constant 0 : i32
    return %arg0, %c0_i32 : i32, i32
  }
}

</mosaic_0001>

<bundles_post_ra>
// kernel: tpu_custom_call.1
= control target key start
LH: loop header
LB: loop body
LE: loop exit
PB: predicated region body
PF: predicated region fallthrough
CT: control target
= control target key end

     0   :  { %10 = vsyncpa [#allocation3], 0  ;;  %s529_s0 = inlined_call_operand.hbm [shape: f32[8,36], index: 0, kind: input, shape index: {}]   ;;  %s530_s1 = inlined_call_operand.hbm [shape: f32[8,64], index: 1, kind: input, shape index: {}]   ;;  %s531_s2 = inlined_call_operand.hbm [shape: f32[36,128], index: 2, kind: input, shape index: {}]   ;;  %s532_s3 = inlined_call_operand.hbm [shape: f32[128,128], index: 3, kind: input, shape index: {}]   ;;  %s533_s4 = inlined_call_operand.hbm [shape: f32[36,128], index: 4, kind: input, shape index: {}]   ;;  %s534_s5 = inlined_call_operand.hbm [shape: f32[8,64], index: 5, kind: output, shape index: {}]  }
   0x1   :  { %11 = vsyncpa [#allocation6], 0 }
   0x2   :  { %12 = vsyncpa [#allocation9], 0  ;;  %s30_s20 = sshll.u32 %s530_s1, 4  ;;  %s31_s20 = int_to_ptr.hbm [resolvable:$true] %s30_s20 }
   0x3   :  { %13 = vsyncpa [#allocation4], 0  ;;  %s451_s21 = smov [#allocation5]   ;;  %s53_s25 = sshll.u32 %s532_s3, 4  ;;  %s54_s25 = int_to_ptr.hbm [resolvable:$true] %s53_s25 }
   0x4   :  { %s32_s22 = sshll.u32 %s451_s21, 4  ;;  %s452_s26 = smov [#allocation8]   ;;  %s33_s22 = int_to_ptr.vmem [resolvable:$true] %s32_s22 }
   0x5   :  { %35 = dma.hbm_to_vmem [thread:$0]  %s31_s20, 128, %s33_s22, [#allocation6]  }
   0x6   :  { %s55_s27 = sshll.u32 %s452_s26, 4  ;;  %s19_s30 = sshll.u32 %s529_s0, 4  ;;  %s56_s27 = int_to_ptr.vmem [resolvable:$true] %s55_s27  ;;  %s20_s30 = int_to_ptr.hbm [resolvable:$true] %s19_s30 }
   0x7   :  { %s453_s1 = smov 128   ;;  %s454_s6 = smov 8  }
   0x8   :  { %61 = dma.hbm_to_vmem [thread:$0]  %s54_s25, 2048, %s56_s27, [#allocation9], %s453_s1, %s453_s1, %s454_s6  }
   0x9   :  { %s40_s9 = sshll.u32 %s531_s2, 4  ;;  %s455_s10 = smov [#allocation2]   ;;  %s41_s9 = int_to_ptr.hbm [resolvable:$true] %s40_s9 }
   0xa   :  { %s21_s11 = sshll.u32 %s455_s10, 4  ;;  %s456_s3 = smov [#allocation7]   ;;  %s22_s11 = int_to_ptr.vmem [resolvable:$true] %s21_s11 }
   0xb   :  { %24 = dma.hbm_to_vmem [thread:$0]  %s20_s30, 128, %s22_s11, [#allocation3]  }
   0xc   :  { %s42_s12 = sshll.u32 %s456_s3, 4  ;;  %s66_s0 = sshll.u32 %s533_s4, 4  ;;  %s43_s12 = int_to_ptr.vmem [resolvable:$true] %s42_s12  ;;  %s67_s0 = int_to_ptr.hbm [resolvable:$true] %s66_s0 }
   0xd   :  { %48 = dma.hbm_to_vmem [thread:$0]  %s41_s9, 640, %s43_s12, [#allocation6], %s453_s1, %s453_s1, %s454_s6  }
   0xe   :  { %s457_s15 = smov [#allocation10]  }
   0xf   :  { %s68_s16 = sshll.u32 %s457_s15, 4  ;;  %s69_s16 = int_to_ptr.vmem [resolvable:$true] %s68_s16 }
  0x10   :  { %74 = dma.hbm_to_vmem [thread:$0]  %s67_s0, 640, %s69_s16, [#allocation9], %s453_s1, %s453_s1, %s454_s6  }
  0x11   :  { %443 = dma.done.wait [#allocation3], 128  }
  0x12   :  { %444 = vsyncadd [#allocation3], 4294967168 }
  0x13   :  { %445 = dma.done.wait [#allocation6], 768  }
  0x14   :  { %446 = vsyncadd [#allocation6], 4294966528 }
  0x15   :  { %447 = dma.done.wait [#allocation9], 2688  }
  0x16   :  { %448 = vsyncadd [#allocation9], 4294964608  ;;  %vm106_vm0 = vcmask 1043456   ;;  %v101_v0 = vld [vmem:[#allocation10 + $0x20] sm:$0xf]  ;;  %v100_v1 = vld [vmem:[#allocation10 + $0x18] sm:$0xff]  ;;  %v211_v42 = vlaneseq }
  0x17   :  { %v507_v2 = vld [vmem:[#allocation5] sm:$0xff]  ;;  %275 = vmatpush.msk.msra.mxu0 %vm106_vm0, %v101_v0  ;;  %s458_s2 = smov 96   ;;  %s459_s4 = smov 64   ;;  %v167_v4 = vld [vmem:[#allocation8 + $0x78] sm:$0xff]  ;;  %v98_v6 = vld [vmem:[#allocation10 + $0x8] sm:$0xff]  ;;  %vm102_vm1 = vcmask 293888  }
  0x18   :  { %131 = vrot.lane.b32.xlu0 %v507_v2, %s458_s2  ;;  %v99_v3 = vld [vmem:[#allocation10 + $0x10] sm:$0xff]  ;;  %137 = vrot.lane.b32.xlu1 %v507_v2, %s459_s4  ;;  %v165_v7 = vld [vmem:[#allocation8 + $0x68] sm:$0xff]  ;;  %v97_v8 = vld [vmem:[#allocation10] sm:$0xff]  ;;  %s460_s17 = smov 32   ;;  %vm140_vm2 = vcmask 261120   ;;  %vm142_vm3 = vcmask 523264  }
  0x19   :  { %v166_v5 = vld [vmem:[#allocation8 + $0x70] sm:$0xff]  ;;  %122 = vmatpush.msra.mxu0 %v100_v1  ;;  %168 = vmatpush.msra.mxu1 %v167_v4  ;;  %v95_v9 = vld [vmem:[#allocation2] sm:$0xff]  ;;  %v164_v10 = vld [vmem:[#allocation8 + $0x60] sm:$0xff]  ;;  %vm144_vm4 = vcmask 785408   ;;  %v212_v44 = vand.u32 127, %v211_v42  ;;  %s461_s18 = smov [#allocation11]  }
  0x1a   :  { %v163_v11 = vld [vmem:[#allocation8 + $0x58] sm:$0xff]  ;;  %v162_v12 = vld [vmem:[#allocation8 + $0x50] sm:$0xff]  ;;  %v161_v13 = vld [vmem:[#allocation8 + $0x48] sm:$0xff]  ;;  %s261_s19 = sshll.u32 %s461_s18, 4  ;;  %s263_s22 = sshll.u32 %s534_s5, 4  ;;  %s262_s19 = int_to_ptr.vmem [resolvable:$true] %s261_s19  ;;  %s264_s22 = int_to_ptr.hbm [resolvable:$true] %s263_s22 }
  0x1b   :  { %123 = vmatpush.msra.mxu0 %v99_v3  ;;  %169 = vmatpush.msra.mxu1 %v166_v5  ;;  %v160_v14 = vld [vmem:[#allocation8 + $0x40] sm:$0xff]  ;;  %v151_v15 = vld [vmem:[#allocation7 + $0x20] sm:$0xf]  ;;  %v150_v16 = vld [vmem:[#allocation7 + $0x18] sm:$0xff]  ;;  %vm213_vm5 = vcmp.ge.s32.totalorder %v212_v44, 64  ;;  %vm214_vm6 = vcmp.lt.s32.totalorder %v212_v44, 96 }
  0x1c   :  { %v159_v17 = vld [vmem:[#allocation8 + $0x38] sm:$0xff]  ;;  %277 = vmatpush.msk.msra.mxu2 %vm106_vm0, %v151_v15  ;;  %v158_v18 = vld [vmem:[#allocation8 + $0x30] sm:$0xff]  ;;  %v157_v19 = vld [vmem:[#allocation8 + $0x28] sm:$0xff] }
  0x1d   :  { %124 = vmatpush.msra.mxu0 %v98_v6  ;;  %170 = vmatpush.msra.mxu1 %v165_v7  ;;  %v149_v20 = vld [vmem:[#allocation7 + $0x10] sm:$0xff]  ;;  %v156_v21 = vld [vmem:[#allocation8 + $0x20] sm:$0xff]  ;;  %v155_v23 = vld [vmem:[#allocation8 + $0x18] sm:$0xff] }
  0x1e   :  { %203 = vmatpush.msra.mxu2 %v150_v16  ;;  %v148_v22 = vld [vmem:[#allocation7 + $0x8] sm:$0xff]  ;;  %v147_v24 = vld [vmem:[#allocation7] sm:$0xff]  ;;  %v154_v25 = vld [vmem:[#allocation8 + $0x10] sm:$0xff] }
  0x1f   :  { %125 = vmatpush.msra.mxu0 %v97_v8  ;;  %171 = vmatpush.msra.mxu1 %v164_v10  ;;  %v153_v26 = vld [vmem:[#allocation8 + $0x8] sm:$0xff]  ;;  %v152_v27 = vld [vmem:[#allocation8] sm:$0xff]  ;;  %vm215_vm8 = vmand %vm213_vm5, %vm214_vm6 }
  0x20   :  { %134 = vrot.lane.b32.xlu0 %v507_v2, %s460_s17  ;;  %276 = vmatmul.msk.f32.vlgmr.msra.gmra.mxu0 %vm102_vm1, %v95_v9 }
  0x21   :  { %172 = vmatpush.msra.mxu1 %v163_v11  ;;  %204 = vmatpush.msra.mxu2 %v149_v20 }
  0x23   :  { %173 = vmatpush.msra.mxu1 %v162_v12  ;;  %205 = vmatpush.msra.mxu2 %v148_v22 }
  0x25   :  { %174 = vmatpush.msra.mxu1 %v161_v13  ;;  %206 = vmatpush.msra.mxu2 %v147_v24 }
  0x26   :  { %278 = vmatmul.msk.f32.vlgmr.msra.gmra.mxu2 %vm102_vm1, %v95_v9 }
  0x27   :  { %175 = vmatpush.msra.mxu1 %v160_v14 }
  0x29   :  { %176 = vmatpush.msra.mxu1 %v159_v17 }
  0x2b   :  { %177 = vmatpush.msra.mxu1 %v158_v18 }
  0x2d   :  { %178 = vmatpush.msra.mxu1 %v157_v19 }
  0x2f   :  { %179 = vmatpush.msra.mxu1 %v156_v21 }
  0x31   :  { %180 = vmatpush.msra.mxu1 %v155_v23 }
  0x33   :  { %181 = vmatpush.msra.mxu1 %v154_v25 }
  0x35   :  { %182 = vmatpush.msra.mxu1 %v153_v26 }
  0x37   :  { %183 = vmatpush.msra.mxu1 %v152_v27 }
  0x8a   :  { %v132_v28 = vpop.permute.xlu0 %131  ;;  %v138_v32 = vpop.permute.xlu1 %137 }
  0x8b   :  { %v141_v29 = vsel %vm140_vm2, %v132_v28, %v507_v2 }
  0x92   :  { %v135_v30 = vpop.permute.xlu0 %134 }
  0x93   :  { %v143_v31 = vsel %vm142_vm3, %v141_v29, %v135_v30 }
  0x94   :  { %v145_v34 = vsel %vm144_vm4, %v143_v31, %v138_v32 }
  0x9d   :  { %v127_v33 = vpop.f32.mrf.mxu0 }
  0x9e   :  { %v146_v35 = vmul.f32 %v145_v34, %v127_v33 }
  0xa0   :  { %184 = vmatmul.f32.vlgmr.msra.gmra.mxu1 %v146_v35 }
  0xa9   :  { %v208_v36 = vpop.f32.mrf.mxu2 }
 0x11d   :  { %v185_v37 = vpop.f32.mrf.mxu1 }
 0x11e   :  { %v209_v38 = vadd.f32 %v208_v36, %v185_v37 }
 0x120   :  { %v279_v39 = vmul.f32 -1.442695, %v209_v38 }
 0x122   :  { %291 = vpow2.f32 %v279_v39 }
 0x128   :  { %v292_v40 = vpop.eup %291 }
 0x129   :  { %v220_v41 = vadd.f32 1.0, %v292_v40 }
 0x12b   :  { %293 = vrcp.f32 %v220_v41  ;;  %v232_v47 = vand.u32 2147483648, %v220_v41  ;;  %v230_v49 = vand.u32 2147483647, %v220_v41  ;;  %vm226_vm9 = vweird.f32 %v220_v41 }
 0x12c   :  { %295 = vtanh.f32 %v209_v38 }
 0x12d   :  { %v233_v51 = vor.u32 1.1754944e-38, %v232_v47  ;;  %vm231_vm11 = vcmp.eq.f32.partialorder %v230_v49, 8.507059e+37 }
 0x131   :  { %v294_v43 = vpop.eup %293 }
 0x132   :  { %v222_v45 = vmul.f32 %v294_v43, %v220_v41  ;;  %vm227_vm7 = vweird.f32 %v294_v43  ;;  %v296_v53 = vpop.eup %295 }
 0x133   :  { %vm228_vm10 = vmor %vm226_vm9, %vm227_vm7 }
 0x134   :  { %v223_v46 = vsub.f32 1.0, %v222_v45 }
 0x136   :  { %v224_v48 = vmul.f32 %v294_v43, %v223_v46 }
 0x138   :  { %v225_v50 = vadd.f32 %v294_v43, %v224_v48 }
 0x13a   :  { %v229_v52 = vsel %vm228_vm10, %v294_v43, %v225_v50 }
 0x13b   :  { %v234_v54 = vsel %vm231_vm11, %v233_v51, %v229_v52 }
 0x13c   :  { %v236_v55 = vsel %vm215_vm8, %v296_v53, %v234_v54 }
 0x13d   :  { %238 = vrot.lane.b32.xlu1 %v236_v55, %s459_s4  ;;  %v242_v56 = vmul.f32 %v236_v55, %v132_v28 }
 0x13f   :  { %244 = vrot.lane.b32.xlu2 %v242_v56, %s460_s17 }
 0x199   :  { %v245_v59 = vpop.permute.xlu2 %244 }
 0x1af   :  { %v239_v57 = vpop.permute.xlu1 %238 }
 0x1b0   :  { %v241_v58 = vmul.f32 %v239_v57, %v236_v55 }
 0x1b2   :  { %v247_v60 = vadd.f32 %v245_v59, %v241_v58 }
 0x1b4   :  { %297 = vtanh.f32 %v247_v60 }
 0x1ba   :  { %v298_v61 = vpop.eup %297 }
 0x1bb   :  { %250 = vrot.lane.b32.xlu2 %v298_v61, %s460_s17 }
 0x215   :  { %v251_v62 = vpop.permute.xlu2 %250 }
 0x216   :  { %v253_v63 = vmul.f32 %v251_v62, %v236_v55 }
 0x218   :  { %v254_v0 = vsel %vm140_vm2, %v247_v60, %v253_v63 }
 0x219   :  { %255 = vst.msk [vmem:[#allocation11] sm:$0xff] %vm142_vm3, %v254_v0 }
 0x21a   :  { %266 = dma.vmem_to_hbm [thread:$0]  %s262_s19, 128, %s264_s22, [#allocation4]  }
 0x21b   :  { %449 = dma.done.wait [#allocation4], 128  }
 0x21c   :  { %450 = vsyncadd [#allocation4], 4294967168 }
 0x21d   :  { %271 = vsyncpa [#allocation3], 1 }
 0x21e   :  { %272 = vsyncpa [#allocation6], 1 }
 0x21f   :  { %273 = vsyncpa [#allocation9], 1 }
 0x220   :  { %274 = vsyncpa [#allocation4], 1 }

</bundles_post_ra>
